<compile_context>
chip_gen: v7x
topology: tpu7x:2x2x1
jax: 0.10.0
libtpu: 0.0.40
codegen_flags: <defaults>
</compile_context>

<pallas_src>
import jax
import jax.numpy as jnp
from jax.experimental import pallas as pl
from jax.experimental.pallas import tpu as pltpu


def _mlp_kernel(x_ref, w1_ref, b1_ref, w2_row_ref, b2_ref, o_ref):
    # x_ref      : (TB, D)   VMEM  (batch tile, pipelined per grid step)
    # w1_ref     : (D,  H)   VMEM  (resident across grid steps)
    # b1_ref     : (1,  H)   VMEM  (resident)
    # w2_row_ref : (1,  H)   VMEM  (fc2 weights as a row; resident)
    # b2_ref     : (1,)      SMEM  (scalar bias)
    # o_ref      : (1,  TB)  VMEM  (lane-dense output: batch on the lane axis)
    x = x_ref[...]

    # fc1 on the MXU, f32 accumulation; bias + ReLU on the VPU in f32.
    h = jnp.dot(x, w1_ref[...], preferred_element_type=jnp.float32)
    h = jnp.maximum(h + b1_ref[...], 0.0)

    # fc2: (H -> 1). A matmul here would waste the MXU (one output column),
    # so do a VPU multiply + XLU lane reduction instead.
    y = jnp.sum(h * w2_row_ref[...], axis=-1)           # (TB,)
    y = y + b2_ref[0]                                    # scalar bias from SMEM

    # Lane-dense store: (1, TB) with batch along lanes (unmasked vst).
    o_ref[...] = y.reshape(1, -1).astype(o_ref.dtype)


def anomaly_detection_forward(x, w1, b1, w2, b2, *, block_b=128, use_bf16=False):
    """Forward pass of AnomalyDetectionModel.

    x : (B, D) f32      w1: (D, H)   b1: (H,)   w2: (H, 1)   b2: (1,)
    Returns (B, 1) f32.

    block_b: batch-tile size; must be a multiple of 128 (lane-dense output
             blocks). For very large B, increase it (e.g. 512-1024); on v7x
             size against 64 MiB VMEM (double-buffered x tile + resident
             weights) and raise vmem_limit_bytes if tiles get large.
    use_bf16: cast x / w1 to bf16 for the fc1 MXU matmul (v6e/v7x);
              accumulation and all elementwise math remain f32.
    """
    B, D = x.shape
    H = w1.shape[1]
    assert w1.shape[0] == D and b1.shape == (H,)
    assert w2.shape == (H, 1) and b2.shape == (1,)
    assert block_b % 128 == 0, "block_b must be a multiple of 128"

    # Pad the batch so it divides evenly into lane-dense tiles.
    num_tiles = (B + block_b - 1) // block_b
    Bp = num_tiles * block_b
    if Bp != B:
        x = jnp.pad(x, ((0, Bp - B), (0, 0)))

    if use_bf16:
        x = x.astype(jnp.bfloat16)
        w1 = w1.astype(jnp.bfloat16)

    b1_row = b1.reshape(1, H).astype(jnp.float32)
    w2_row = w2.reshape(1, H).astype(jnp.float32)   # (H,1) -> (1,H) row
    b2_s = b2.reshape(1).astype(jnp.float32)        # SMEM scalar

    in_bytes = x.size * x.dtype.itemsize + w1.size * w1.dtype.itemsize
    cost = pl.CostEstimate(
        flops=2 * Bp * D * H + 2 * Bp * H,
        transcendentals=0,
        bytes_accessed=in_bytes + (H + H + 1) * 4 + Bp * 4,
    )

    out_row = pl.pallas_call(
        _mlp_kernel,
        out_shape=jax.ShapeDtypeStruct((1, Bp), jnp.float32),
        grid_spec=pl.GridSpec(
            grid=(num_tiles,),
            in_specs=[
                # x: one batch tile per grid step (pipelined DMA).
                pl.BlockSpec((block_b, D), lambda i: (i, 0)),
                # Weights / biases: constant index_map -> VMEM-resident.
                pl.BlockSpec((D, H), lambda i: (0, 0)),
                pl.BlockSpec((1, H), lambda i: (0, 0)),
                pl.BlockSpec((1, H), lambda i: (0, 0)),
                # b2: single scalar in SMEM (no padded VMEM tile).
                pl.BlockSpec(memory_space=pltpu.MemorySpace.SMEM),
            ],
            # Lane-dense output: batch on the last (lane) axis.
            out_specs=pl.BlockSpec((1, block_b), lambda i: (0, i)),
        ),
        compiler_params=pltpu.CompilerParams(
            dimension_semantics=("parallel",),  # batch tiles are independent
        ),
        cost_estimate=cost,
    )(x, w1, b1_row, w2_row, b2_s)

    # (1, Bp) -> (Bp, 1) is a pure row-major relabel; then drop batch padding.
    return out_row.reshape(Bp, 1)[:B]


def _ref_forward(x, w1, b1, w2, b2):
    h = jnp.maximum(x @ w1 + b1, 0.0)
    return h @ w2 + b2


if __name__ == "__main__":
    # Small shapes consistent with the module; B is not a multiple of the tile
    # size so the padding + multi-tile grid path is exercised.
    B, D, H = 300, 32, 32

    key = jax.random.PRNGKey(0)
    kx, kw1, kb1, kw2, kb2 = jax.random.split(key, 5)

    bound1 = 1.0 / jnp.sqrt(D)
    bound2 = 1.0 / jnp.sqrt(H)
    x = jax.random.normal(kx, (B, D), dtype=jnp.float32)
    w1 = jax.random.uniform(kw1, (D, H), jnp.float32, -bound1, bound1)
    b1 = jax.random.uniform(kb1, (H,), jnp.float32, -bound1, bound1)
    w2 = jax.random.uniform(kw2, (H, 1), jnp.float32, -bound2, bound2)
    b2 = jax.random.uniform(kb2, (1,), jnp.float32, -bound2, bound2)

    ref = _ref_forward(x, w1, b1, w2, b2)

    # f32 path
    out = jax.block_until_ready(anomaly_detection_forward(x, w1, b1, w2, b2))
    assert out.shape == (B, 1)
    assert jnp.allclose(out, ref, atol=1e-4, rtol=1e-4)

    # bf16 fc1 path (v6e/v7x MXU format); looser tolerance for bf16 inputs.
    out_bf16 = jax.block_until_ready(
        anomaly_detection_forward(x, w1, b1, w2, b2, use_bf16=True)
    )
    assert out_bf16.shape == (B, 1)
    assert jnp.allclose(out_bf16, ref, atol=5e-2, rtol=5e-2)

    print("KERNEL_OK")
</pallas_src>

<mosaic_0001>
module attributes {stable_mosaic.version = 11 : i64} {
  func.func @_mlp_kernel(%arg0: i32, %arg1: memref<128x32xf32, #tpu.memory_space<vmem>>, %arg2: memref<32x32xf32, #tpu.memory_space<vmem>>, %arg3: memref<1x32xf32, #tpu.memory_space<vmem>>, %arg4: memref<1x32xf32, #tpu.memory_space<vmem>>, %arg5: memref<1xf32, #tpu.memory_space<smem>>, %arg6: memref<1x128xf32, #tpu.memory_space<vmem>>) attributes {dimension_semantics = [#tpu.dimension_semantics<parallel>], iteration_bounds = array<i64: 3>, scalar_prefetch = 0 : i64, scratch_operands = 0 : i64, tpu.core_type = #tpu.core_type<tc>, window_params = [{transform_indices = @transform_0, window_bounds = array<i64: 128, 32>}, {pipeline_mode = #tpu.pipeline_mode<synchronous>, transform_indices = @transform_1, window_bounds = array<i64: 32, 32>}, {pipeline_mode = #tpu.pipeline_mode<synchronous>, transform_indices = @transform_2, window_bounds = array<i64: 1, 32>}, {pipeline_mode = #tpu.pipeline_mode<synchronous>, transform_indices = @transform_3, window_bounds = array<i64: 1, 32>}, {transform_indices = @transform_4, window_bounds = array<i64: 1>}, {transform_indices = @transform_5, window_bounds = array<i64: 1, 128>}]} {
    %c0 = arith.constant 0 : index
    %c0_0 = arith.constant 0 : index
    %0 = vector.load %arg1[%c0, %c0_0] : memref<128x32xf32, #tpu.memory_space<vmem>>, vector<128x32xf32>
    %c0_1 = arith.constant 0 : index
    %c0_2 = arith.constant 0 : index
    %1 = vector.load %arg2[%c0_1, %c0_2] : memref<32x32xf32, #tpu.memory_space<vmem>>, vector<32x32xf32>
    %cst = arith.constant dense<0.000000e+00> : vector<128x32xf32>
    %2 = tpu.matmul %0, %1, %cst {dimension_numbers = #tpu.dot_dimension_numbers<[1], [0], [0], [1], [0, 0, 1, 1], [], []>} : vector<128x32xf32>, vector<32x32xf32>, vector<128x32xf32> -> vector<128x32xf32>
    %c0_3 = arith.constant 0 : index
    %c0_4 = arith.constant 0 : index
    %3 = vector.load %arg3[%c0_3, %c0_4] : memref<1x32xf32, #tpu.memory_space<vmem>>, vector<1x32xf32>
    %4 = vector.broadcast %3 : vector<1x32xf32> to vector<128x32xf32>
    %5 = arith.addf %2, %4 : vector<128x32xf32>
    %cst_5 = arith.constant 0.000000e+00 : f32
    %6 = vector.broadcast %cst_5 : f32 to vector<128x32xf32>
    %7 = arith.maximumf %5, %6 : vector<128x32xf32>
    %c0_6 = arith.constant 0 : index
    %c0_7 = arith.constant 0 : index
    %8 = vector.load %arg4[%c0_6, %c0_7] : memref<1x32xf32, #tpu.memory_space<vmem>>, vector<1x32xf32>
    %9 = vector.broadcast %8 : vector<1x32xf32> to vector<128x32xf32>
    %10 = arith.mulf %7, %9 : vector<128x32xf32>
    %cst_8 = arith.constant dense<0.000000e+00> : vector<128xf32>
    %11 = vector.multi_reduction <add>, %10, %cst_8 [1] : vector<128x32xf32> to vector<128xf32>
    %c0_9 = arith.constant 0 : index
    %12 = memref.load %arg5[%c0_9] : memref<1xf32, #tpu.memory_space<smem>>
    %13 = vector.broadcast %12 : f32 to vector<128xf32>
    %14 = arith.addf %11, %13 : vector<128xf32>
    %15 = vector.shape_cast %14 : vector<128xf32> to vector<1x128xf32>
    %c0_10 = arith.constant 0 : index
    %c0_11 = arith.constant 0 : index
    %16 = vector.load %arg6[%c0_10, %c0_11] : memref<1x128xf32, #tpu.memory_space<vmem>>, vector<1x128xf32>
    tpu.vector_store %arg6[%c0_10, %c0_11], %15 {strides = array<i32>} : memref<1x128xf32, #tpu.memory_space<vmem>>, vector<1x128xf32>,
    return
  }
  func.func @transform_0(%arg0: i32) -> (i32, i32) {
    %c0_i32 = arith.constant 0 : i32
    %c0_i32_0 = arith.constant 0 : i32
    return %arg0, %c0_i32 : i32, i32
  }
  func.func @transform_1(%arg0: i32) -> (i32, i32) {
    %c0_i32 = arith.constant 0 : i32
    %c0_i32_0 = arith.constant 0 : i32
    %c0_i32_1 = arith.constant 0 : i32
    return %c0_i32, %c0_i32_0 : i32, i32
  }
  func.func @transform_2(%arg0: i32) -> (i32, i32) {
    %c0_i32 = arith.constant 0 : i32
    %c0_i32_0 = arith.constant 0 : i32
    %c0_i32_1 = arith.constant 0 : i32
    return %c0_i32, %c0_i32_0 : i32, i32
  }
  func.func @transform_3(%arg0: i32) -> (i32, i32) {
    %c0_i32 = arith.constant 0 : i32
    %c0_i32_0 = arith.constant 0 : i32
    %c0_i32_1 = arith.constant 0 : i32
    return %c0_i32, %c0_i32_0 : i32, i32
  }
  func.func @transform_4(%arg0: i32) -> i32 {
    %c0_i32 = arith.constant 0 : i32
    %c0_i32_0 = arith.constant 0 : i32
    return %c0_i32 : i32
  }
  func.func @transform_5(%arg0: i32) -> (i32, i32) {
    %c0_i32 = arith.constant 0 : i32
    %c0_i32_0 = arith.constant 0 : i32
    return %c0_i32, %arg0 : i32, i32
  }
}

</mosaic_0001>

<bundles_post_ra>
// kernel: tpu_custom_call.1
= control target key start
LH: loop header
LB: loop body
LE: loop exit
PB: predicated region body
PF: predicated region fallthrough
CT: control target
= control target key end

     0   :  { %s1262_s0 = inlined_call_operand.vmem [shape: f32[384,32], index: 0, kind: input, shape index: {}]   ;;  %s1263_s1 = inlined_call_operand.vmem [shape: f32[32,32], index: 1, kind: input, shape index: {}]   ;;  %s1264_s2 = inlined_call_operand.vmem [shape: f32[1,32], index: 2, kind: input, shape index: {}]   ;;  %s1265_s3 = inlined_call_operand.vmem [shape: f32[1,32], index: 3, kind: input, shape index: {}]   ;;  %s1266_s4 = inlined_call_operand.<no memory space> [shape: f32[1], index: 4, kind: input, shape index: {}]   ;;  %s1267_s5 = inlined_call_operand.hbm [shape: f32[1,384], index: 5, kind: output, shape index: {}]  }
   0x1   :  { %10 = sst [smem:[#allocation2]] %s1266_s4 }
   0x2   :  { %11 = vsyncpa [#allocation4], 0 }
   0x3   :  { %13 = vsyncpa [#allocation4 + $0x1], 0  ;;  %s976_s20 = smov 0   ;;  %s978_s21 = smov 0  }
   0x4   :  { %s980_s22 = smov 0   ;;  %s982_s23 = smov 0  }
   0x5 LB: > { %s747_s4 = sadd.s32 4294967295, %s940_s23   ;;  %s748_s24 = sadd.s32 4294967294, %s940_s23   ;;  %s940_s23 = sphi %s982_s23, %s1273_s23   ;;  %s936_s22 = sphi %s980_s22, %s1272_s22   ;;  %s932_s21 = sphi %s978_s21, %s1271_s21   ;;  %s928_s20 = sphi %s976_s20, %s1270_s20  }
   0x6   : > { %s999_s25 = sadd.s32 1, %s940_s23   ;;  %s136_s26 = sadd.s32 1, %s936_s22 }
   0x7   : > { %s133_s27 = ssub.s32 %s940_s23, %s999_s25  ;;  %p146_p0 = scmp.ne.s32.totalorder %s936_s22, %s932_s21 }
   0x8   : > { %p134_p1 = scmp.eq.s32.totalorder %s133_s27, 0  ;;  %p147_p2 = scmp.eq.s32.totalorder %s747_s4, 2 }
   0x9   : > { %p152_p3 = scmp.ne.s32.totalorder %s932_s21, %s928_s20  ;;  %p153_p4 = scmp.eq.s32.totalorder %s748_s24, 2 }
   0xa   : > { %s1009_s28 = scalar_select %p134_p1, %s936_s22, %s136_s26  }
   0xb   : > { %p1011_p5 = por %p147_p2, %p146_p0  ;;  %p1015_p6 = por %p153_p4, %p152_p3 }
   0xc   : > { %p751_p7 = scmp.ge.s32.totalorder %s940_s23, 1  ;;  %p192_p8 = scmp.lt.s32.totalorder %s940_s23, 4 }
   0xe   : > { %p193_p9 = pnand %p751_p7, %p192_p8 }
   0xf   : > { %v241_v0 = vld [vmem:[%s1263_s1] sm:$0xff] (!%p193_p9)  ;;  %v242_v1 = vld [vmem:[%s1263_s1 + $0x8] sm:$0xff] (!%p193_p9)  ;;  %v243_v2 = vld [vmem:[%s1263_s1 + $0x10] sm:$0xff] (!%p193_p9)  ;;  %s1030_s12 = sshll.u32 (!%p193_p9), %s747_s4, 4  ;;  %vm252_vm0 = vcmask (!%p193_p9), 261120   ;;  %s533_s6 = sld [smem:[#allocation2]] (!%p193_p9) }
  0x10   : > { %196 = sbr.rel (%p193_p9) target bundleno = 438 (0x1b6), region = 40  ;;  %v827_v3 = vpack.c.bf16 (!%p193_p9), %v242_v1, %v241_v0  ;;  %v244_v4 = vld [vmem:[%s1263_s1 + $0x18] sm:$0xff] (!%p193_p9)  ;;  %p220_p10 = scmp.lt.s32.totalorder (!%p193_p9), %s1030_s12, 47  ;;  %v1077_v22 = vld [vmem:[%s1264_s2] ss:$0 sm:$0xff] (!%p193_p9)  ;;  %vm578_vm1 = vcmask (!%p193_p9), 130112  }
  0x11   : > { %v831_v5 = vpack.c.bf16 (!%p193_p9), %v244_v4, %v243_v2  ;;  %v1086_v31 = vld [vmem:[%s1265_s3] ss:$0 sm:$0xff] (!%p193_p9)  ;;  %vm585_vm2 = vcmask (!%p193_p9), 195712   ;;  %vm592_vm3 = vcmask (!%p193_p9), 261312   ;;  %vm599_vm4 = vcmask (!%p193_p9), 326912   ;;  %s217_s7 = sand.u32 (!%p193_p9), 1, %s932_s21   ;;  %s1218_s13 = scalar_lea.hbm (!%p193_p9), %s1267_s5, %s1030_s12 }
  0x12   : > { %828 = vmatprep.subr.bf16.mxu0 (!%p193_p9), %v827_v3  ;;  %835 = vmatprep.subr.bf16.mxu1 (!%p193_p9), %v827_v3  ;;  %vm606_vm5 = vcmask (!%p193_p9), 392512   ;;  %vm613_vm6 = vcmask (!%p193_p9), 458112   ;;  %vm620_vm7 = vcmask (!%p193_p9), 523712   ;;  %vm627_vm8 = vcmask (!%p193_p9), 589312   ;;  %s218_s8 = scalar_lea.vmem (!%p193_p9), [#allocation3], %s217_s7  ;;  %s681_s14 = scalar_lea.sflag (!%p193_p9), [#allocation4], %s217_s7 }
  0x13   : > { %830 = vmatpush3.bf16.msra.mxu0 (!%p193_p9), %v827_v3  ;;  %837 = vmatpush3.bf16.msra.mxu1 (!%p193_p9), %v827_v3  ;;  %vm634_vm9 = vcmask (!%p193_p9), 654912   ;;  %vm641_vm10 = vcmask (!%p193_p9), 720512   ;;  %vm648_vm11 = vcmask (!%p193_p9), 786112   ;;  %vm655_vm12 = vcmask (!%p193_p9), 851712   ;;  %s693_s9 = sshll.u32 (!%p193_p9), %s218_s8, 4  ;;  %s1220_s9 = int_to_ptr.vmem [resolvable:$true] %s693_s9 }
  0x14   : > { %832 = vmatprep.subr.bf16.mxu0 (!%p193_p9), %v831_v5  ;;  %836 = vmatprep.subr.bf16.mxu1 (!%p193_p9), %v831_v5  ;;  %vm662_vm13 = vcmask (!%p193_p9), 917312   ;;  %vm669_vm14 = vcmask (!%p193_p9), 982912   ;;  %vm676_vm15 = vcmask (!%p193_p9), 1048512  }
  0x17   : > { %s221_s15 = scalar_select %p220_p10, %s1030_s12, 47  ;;  %834 = vmatpush3.bf16.msra.mxu0 %v831_v5  ;;  %838 = vmatpush3.bf16.msra.mxu1 %v831_v5 }
  0x19   : > { %s753_s16 = sshll.u32 %s221_s15, 3  ;;  %s878_s15 = scalar_lea.vmem %s1220_s9, 16 }
  0x1a   : > { %s1040_s19 = scalar_lea.vmem %s1262_s0, %s753_s16  ;;  %p879_p11 = scmp.ne.s32.totalorder %s1220_s9, %s878_s15 }
  0x1b   : > { %v225_v6 = vld [vmem:[%s1040_s19] sm:$0xff]  ;;  %v226_v8 = vld [vmem:[%s1040_s19 + $0x8] sm:$0xff]  ;;  %v227_v10 = vld [vmem:[%s1040_s19 + $0x10] sm:$0xff]  ;;  %s942_s16 = smov [#allocation3]  }
  0x1c   : > { %v233_v7 = vld [vmem:[%s1040_s19 + $0x40] sm:$0xff]  ;;  %v234_v9 = vld [vmem:[%s1040_s19 + $0x48] sm:$0xff]  ;;  %803 = vmatprep.mubr.msk.f32.mxu0 %vm252_vm0, %v225_v6  ;;  %v235_v11 = vld [vmem:[%s1040_s19 + $0x50] sm:$0xff]  ;;  %p880_p12 = pnand %p879_p11, %p1011_p5  ;;  %s882_s17 = sshll.u32 %s942_s16, 4  ;;  %s883_s17 = int_to_ptr.vmem [resolvable:$false] %s882_s17 }
  0x1d   : > { %815 = vmatprep.mubr.msk.f32.mxu1 %vm252_vm0, %v233_v7  ;;  %804 = vmatmul.mubr.msk.f32.vlgmr.msra.gmra.mrb[0].mxu0 %vm252_vm0, %v226_v8  ;;  %v228_v12 = vld [vmem:[%s1040_s19 + $0x18] sm:$0xff]  ;;  %v229_v14 = vld [vmem:[%s1040_s19 + $0x20] sm:$0xff]  ;;  %v230_v16 = vld [vmem:[%s1040_s19 + $0x28] sm:$0xff]  ;;  %s884_s18 = scalar_lea.vmem %s883_s17, 32  ;;  %p885_p0 = scmp.lt.s32.totalorder %s1220_s9, %s883_s17 }
  0x1e   : > { %816 = vmatmul.mubr.msk.f32.vlgmr.msra.gmra.mrb[0].mxu1 %vm252_vm0, %v234_v9  ;;  %806 = vmatprep.mubr.msk.f32.mxu0 %vm252_vm0, %v227_v10  ;;  %v236_v13 = vld [vmem:[%s1040_s19 + $0x58] sm:$0xff]  ;;  %v237_v15 = vld [vmem:[%s1040_s19 + $0x60] sm:$0xff]  ;;  %v238_v17 = vld [vmem:[%s1040_s19 + $0x68] sm:$0xff]  ;;  %p881_p13 = pneg %p880_p12  ;;  %p886_p1 = scmp.lt.s32.totalorder %s884_s18, %s878_s15 }
  0x1f   : > { %818 = vmatprep.mubr.msk.f32.mxu1 %vm252_vm0, %v235_v11  ;;  %v231_v18 = vld [vmem:[%s1040_s19 + $0x30] sm:$0xff]  ;;  %v232_v20 = vld [vmem:[%s1040_s19 + $0x38] sm:$0xff] }
  0x20   : > { %v239_v19 = vld [vmem:[%s1040_s19 + $0x70] sm:$0xff]  ;;  %v240_v21 = vld [vmem:[%s1040_s19 + $0x78] sm:$0xff]  ;;  %p887_p2 = por %p886_p1, %p885_p0 }
  0x21   : > { %807 = vmatmul.mubr.msk.f32.gmra.mrb[2].mxu0 %vm252_vm0, %v228_v12 }
  0x22   : > { %819 = vmatmul.mubr.msk.f32.gmra.mrb[2].mxu1 %vm252_vm0, %v236_v13  ;;  %809 = vmatprep.mubr.msk.f32.mxu0 %vm252_vm0, %v229_v14  ;;  %p888_p3 = pnand %p887_p2, %p881_p13 }
  0x23   : > { %821 = vmatprep.mubr.msk.f32.mxu1 %vm252_vm0, %v237_v15 }
  0x25   : > { %810 = vmatmul.mubr.msk.f32.gmra.mrb[4].mxu0 %vm252_vm0, %v230_v16 }
  0x26   : > { %822 = vmatmul.mubr.msk.f32.gmra.mrb[4].mxu1 %vm252_vm0, %v238_v17  ;;  %812 = vmatprep.mubr.msk.f32.mxu0 %vm252_vm0, %v231_v18 }
  0x27   : > { %824 = vmatprep.mubr.msk.f32.mxu1 %vm252_vm0, %v239_v19 }
  0x29   : > { %813 = vmatmul.mubr.msk.f32.gmra.mrb[6].mxu0 %vm252_vm0, %v232_v20 }
  0x2a   : > { %825 = vmatmul.mubr.msk.f32.gmra.mrb[6].mxu1 %vm252_vm0, %v240_v21 }
  0xf0   : > { %v805_v23 = vpop.f32.mrb[0].mxu0 }
  0xf1   : > { %v817_v24 = vpop.f32.mrb[0].mxu1  ;;  %v373_v25 = vadd.f32 %v805_v23, %v1077_v22  ;;  %v367_v27 = vpop.f32.mrb[1].mxu0 }
  0xf2   : > { %v413_v26 = vadd.f32 %v817_v24, %v1077_v22  ;;  %v407_v28 = vpop.f32.mrb[1].mxu1  ;;  %v368_v29 = vadd.f32 %v1077_v22, %v367_v27 }
  0xf3   : > { %v408_v30 = vadd.f32 %v1077_v22, %v407_v28  ;;  %v447_v32 = vmax.f32 %v373_v25, 0.0 }
  0xf4   : > { %v455_v33 = vmax.f32 %v413_v26, 0.0  ;;  %v446_v34 = vmax.f32 %v368_v29, 0.0  ;;  %v808_v35 = vpop.f32.mrb[2].mxu0 }
  0xf5   : > { %v820_v36 = vpop.f32.mrb[2].mxu1  ;;  %v383_v37 = vadd.f32 %v808_v35, %v1077_v22  ;;  %v377_v38 = vpop.f32.mrb[3].mxu0  ;;  %v470_v41 = vmul.f32 %v1086_v31, %v447_v32  ;;  %v454_v43 = vmax.f32 %v408_v30, 0.0 }
  0xf6   : > { %v478_v39 = vmul.f32 %v1086_v31, %v455_v33  ;;  %v423_v40 = vadd.f32 %v820_v36, %v1077_v22  ;;  %v417_v42 = vpop.f32.mrb[3].mxu1  ;;  %v378_v44 = vadd.f32 %v1077_v22, %v377_v38  ;;  %v469_v46 = vmul.f32 %v1086_v31, %v446_v34 }
  0xf7   : > { %v418_v45 = vadd.f32 %v1077_v22, %v417_v42  ;;  %v449_v47 = vmax.f32 %v383_v37, 0.0  ;;  %v488_v50 = vsel %vm252_vm0, %v470_v41, 0.0  ;;  %v477_v59 = vmul.f32 %v1086_v31, %v454_v43 }
  0xf8   : > { %v512_v48 = vsel %vm252_vm0, %v478_v39, 0.0  ;;  %v457_v49 = vmax.f32 %v423_v40, 0.0  ;;  %489 = vadd.xlane.f32.xlu0 %v488_v50  ;;  %v811_v51 = vpop.f32.mrb[4].mxu0  ;;  %v448_v60 = vmax.f32 %v378_v44, 0.0  ;;  %v485_v63 = vsel %vm252_vm0, %v469_v46, 0.0 }
  0xf9   : > { %513 = vadd.xlane.f32.xlu1 %v512_v48  ;;  %v823_v52 = vpop.f32.mrb[4].mxu1  ;;  %v472_v53 = vmul.f32 %v1086_v31, %v449_v47  ;;  %v393_v54 = vadd.f32 %v811_v51, %v1077_v22  ;;  %v387_v55 = vpop.f32.mrb[5].mxu0  ;;  %v456_v61 = vmax.f32 %v418_v45, 0.0  ;;  %v509_v9 = vsel %vm252_vm0, %v477_v59, 0.0 }
  0xfa   : > { %v480_v56 = vmul.f32 %v1086_v31, %v457_v49  ;;  %v427_v57 = vpop.f32.mrb[5].mxu1  ;;  %v388_v58 = vadd.f32 %v1077_v22, %v387_v55  ;;  %v471_v10 = vmul.f32 %v1086_v31, %v448_v60  ;;  %v433_v12 = vadd.f32 %v823_v52, %v1077_v22 }
  0xfb   : > { %v494_v62 = vsel %vm252_vm0, %v472_v53, 0.0  ;;  %v451_v2 = vmax.f32 %v393_v54, 0.0  ;;  %v479_v11 = vmul.f32 %v1086_v31, %v456_v61  ;;  %v428_v13 = vadd.f32 %v1077_v22, %v427_v57 }
  0xfc   : > { %486 = vadd.xlane.f32.xlu0 %v485_v63  ;;  %v814_v0 = vpop.f32.mrb[6].mxu0  ;;  %v450_v3 = vmax.f32 %v388_v58, 0.0  ;;  %v518_v4 = vsel %vm252_vm0, %v480_v56, 0.0  ;;  %v491_v18 = vsel %vm252_vm0, %v471_v10, 0.0  ;;  %v459_v20 = vmax.f32 %v433_v12, 0.0 }
  0xfd   : > { %495 = vadd.xlane.f32.xlu1 %v494_v62  ;;  %v826_v1 = vpop.f32.mrb[6].mxu1  ;;  %v403_v5 = vadd.f32 %v814_v0, %v1077_v22  ;;  %v397_v6 = vpop.f32.mrb[7].mxu0  ;;  %v474_v16 = vmul.f32 %v1086_v31, %v451_v2  ;;  %v515_v19 = vsel %vm252_vm0, %v479_v11, 0.0  ;;  %v458_v21 = vmax.f32 %v428_v13, 0.0 }
  0xfe   : > { %v437_v7 = vpop.f32.mrb[7].mxu1  ;;  %v398_v8 = vadd.f32 %v1077_v22, %v397_v6  ;;  %v473_v17 = vmul.f32 %v1086_v31, %v450_v3  ;;  %v443_v23 = vadd.f32 %v826_v1, %v1077_v22  ;;  %v482_v29 = vmul.f32 %v1086_v31, %v459_v20 }
  0xff   : > { %v453_v14 = vmax.f32 %v403_v5, 0.0  ;;  %v438_v24 = vadd.f32 %v1077_v22, %v437_v7  ;;  %v500_v25 = vsel %vm252_vm0, %v474_v16, 0.0  ;;  %v481_v30 = vmul.f32 %v1086_v31, %v458_v21 }
 0x100   : > { %510 = vadd.xlane.f32.xlu0 %v509_v9  ;;  %v452_v15 = vmax.f32 %v398_v8, 0.0  ;;  %v497_v26 = vsel %vm252_vm0, %v473_v17, 0.0  ;;  %v461_v32 = vmax.f32 %v443_v23, 0.0  ;;  %v524_v35 = vsel %vm252_vm0, %v482_v29, 0.0 }
 0x101   : > { %519 = vadd.xlane.f32.xlu1 %v518_v4  ;;  %v476_v27 = vmul.f32 %v1086_v31, %v453_v14  ;;  %v460_v33 = vmax.f32 %v438_v24, 0.0  ;;  %v521_v36 = vsel %vm252_vm0, %v481_v30, 0.0  ;;  %v567_v41 = vlaneseq }
 0x102   : > { %v475_v28 = vmul.f32 %v1086_v31, %v452_v15  ;;  %v484_v37 = vmul.f32 %v1086_v31, %v461_v32  ;;  %v1139_v48 = vstv %s533_s6 }
 0x103   : > { %v506_v34 = vsel %vm252_vm0, %v476_v27, 0.0  ;;  %v483_v38 = vmul.f32 %v1086_v31, %v460_v33  ;;  %v1134_v44 = vand.u32 127, %v567_v41  ;;  %v1136_v47 = vshrl.u32 %v567_v41, 7 }
 0x104   : > { %516 = vadd.xlane.f32.xlu0 %v515_v19  ;;  %v503_v22 = vsel %vm252_vm0, %v475_v28, 0.0  ;;  %v530_v39 = vsel %vm252_vm0, %v484_v37, 0.0 }
 0x105   : > { %492 = vadd.xlane.f32.xlu1 %v491_v18  ;;  %v527_v40 = vsel %vm252_vm0, %v483_v38, 0.0  ;;  %v573_v31 = vadd.s32 4294967288, %v1134_v44  ;;  %v580_v49 = vadd.s32 4294967280, %v1134_v44  ;;  %v571_v50 = vsub.s32 %v1134_v44, %v1136_v47 }
 0x106   : > { %v1148_v54 = vadd.s32 4294967224, %v1134_v44  ;;  %v587_v55 = vadd.s32 4294967272, %v1134_v44  ;;  %v1154_v58 = vadd.s32 4294967232, %v1134_v44  ;;  %v594_v60 = vadd.s32 4294967264, %v1134_v44 }
 0x107   : > { %v576_v56 = vsub.s32 %v573_v31, %v1136_v47  ;;  %v583_v59 = vsub.s32 %v580_v49, %v1136_v47  ;;  %v1159_v62 = vadd.s32 4294967208, %v1134_v44  ;;  %v1162_v0 = vadd.s32 4294967216, %v1134_v44 }
 0x108   : > { %498 = vadd.xlane.f32.xlu0 %v497_v26  ;;  %v601_v2 = vadd.s32 4294967256, %v1134_v44  ;;  %v632_v3 = vsub.s32 %v1148_v54, %v1136_v47  ;;  %v590_v4 = vsub.s32 %v587_v55, %v1136_v47  ;;  %v615_v8 = vadd.s32 4294967240, %v1134_v44 }
 0x109   : > { %501 = vadd.xlane.f32.xlu1 %v500_v25  ;;  %v625_v9 = vsub.s32 %v1154_v58, %v1136_v47  ;;  %v597_v11 = vsub.s32 %v594_v60, %v1136_v47  ;;  %v608_v12 = vadd.s32 4294967248, %v1134_v44  ;;  %v646_v14 = vsub.s32 %v1159_v62, %v1136_v47 }
 0x10a   : > { %v639_v15 = vsub.s32 %v1162_v0, %v1136_v47  ;;  %v604_v16 = vsub.s32 %v601_v2, %v1136_v47  ;;  %v618_v24 = vsub.s32 %v615_v8, %v1136_v47  ;;  %v657_v25 = vadd.s32 4294967192, %v1134_v44 }
 0x10b   : > { %v611_v27 = vsub.s32 %v608_v12, %v1136_v47  ;;  %v650_v33 = vadd.s32 4294967200, %v1134_v44 }
 0x10c   : > { %504 = vadd.xlane.f32.xlu0 %v503_v22  ;;  %v660_v38 = vsub.s32 %v657_v25, %v1136_v47 }
 0x10d   : > { %507 = vadd.xlane.f32.xlu1 %v506_v34 }
 0x110   : > { %522 = vadd.xlane.f32.xlu0 %v521_v36 }
 0x111   : > { %525 = vadd.xlane.f32.xlu1 %v524_v35 }
 0x114   : > { %528 = vadd.xlane.f32.xlu0 %v527_v40 }
 0x115   : > { %531 = vadd.xlane.f32.xlu1 %v530_v39  ;;  %v671_v39 = vadd.s32 4294967176, %v1134_v44 }
 0x117   : > { %v674_v58 = vsub.s32 %v671_v39, %v1136_v47 }
 0x185   : > { %v490_v43 = vpop.xlane.xlu0 %489 }
 0x186   : > { %v1132_v42 = vpop.xlane.xlu1 %513  ;;  %v536_v57 = vadd.f32 %v1139_v48, %v490_v43 }
 0x187   : > { %v544_v37 = vadd.f32 %v1139_v48, %v1132_v42  ;;  %v653_v42 = vsub.s32 %v650_v33, %v1136_v47 }
 0x188   : > { %v577_v6 = vrot.slane %v536_v57, %v576_v56 }
 0x189   : > { %v487_v46 = vpop.xlane.xlu0 %486  ;;  %v633_v55 = vrot.slane %v544_v37, %v632_v3 }
 0x18a   : > { %v496_v45 = vpop.xlane.xlu1 %495  ;;  %v535_v51 = vadd.f32 %v1139_v48, %v487_v46 }
 0x18b   : > { %v538_v7 = vadd.f32 %v1139_v48, %v496_v45  ;;  %v664_v45 = vadd.s32 4294967184, %v1134_v44 }
 0x18c   : > { %v572_v61 = vrot.slane %v535_v51, %v571_v50 }
 0x18d   : > { %v511_v53 = vpop.xlane.xlu0 %510  ;;  %v591_v23 = vrot.slane %v538_v7, %v590_v4 }
 0x18e   : > { %v1145_v52 = vpop.xlane.xlu1 %519  ;;  %v579_v13 = vsel %vm578_vm1, %v577_v6, %v572_v61  ;;  %v543_v34 = vadd.f32 %v1139_v48, %v511_v53 }
 0x18f   : > { %v546_v46 = vadd.f32 %v1139_v48, %v1145_v52 }
 0x190   : > { %v626_v51 = vrot.slane %v543_v34, %v625_v9 }
 0x191   : > { %v517_v1 = vpop.xlane.xlu0 %516  ;;  %v647_v60 = vrot.slane %v546_v46, %v646_v14 }
 0x192   : > { %v493_v63 = vpop.xlane.xlu1 %492  ;;  %v545_v40 = vadd.f32 %v1139_v48, %v517_v1 }
 0x193   : > { %v537_v5 = vadd.f32 %v1139_v48, %v493_v63 }
 0x194   : > { %v640_v52 = vrot.slane %v545_v40, %v639_v15 }
 0x195   : > { %v584_v10 = vrot.slane %v537_v5, %v583_v59  ;;  %v499_v18 = vpop.xlane.xlu0 %498  ;;  %v667_v59 = vsub.s32 %v664_v45, %v1136_v47 }
 0x196   : > { %v502_v17 = vpop.xlane.xlu1 %501  ;;  %v539_v21 = vadd.f32 %v1139_v48, %v499_v18 }
 0x197   : > { %v586_v19 = vsel %vm585_vm2, %v584_v10, %v579_v13  ;;  %v540_v20 = vadd.f32 %v1139_v48, %v502_v17 }
 0x198   : > { %v598_v26 = vrot.slane %v539_v21, %v597_v11  ;;  %v593_v29 = vsel %vm592_vm3, %v591_v23, %v586_v19 }
 0x199   : > { %v605_v28 = vrot.slane %v540_v20, %v604_v16  ;;  %v505_v32 = vpop.xlane.xlu0 %504 }
 0x19a   : > { %v508_v30 = vpop.xlane.xlu1 %507  ;;  %v600_v22 = vsel %vm599_vm4, %v598_v26, %v593_v29  ;;  %v541_v36 = vadd.f32 %v1139_v48, %v505_v32 }
 0x19b   : > { %v542_v35 = vadd.f32 %v1139_v48, %v508_v30  ;;  %v607_v31 = vsel %vm606_vm5, %v605_v28, %v600_v22 }
 0x19c   : > { %v612_v43 = vrot.slane %v541_v36, %v611_v27 }
 0x19d   : > { %v619_v41 = vrot.slane %v542_v35, %v618_v24  ;;  %v523_v50 = vpop.xlane.xlu0 %522 }
 0x19e   : > { %v526_v49 = vpop.xlane.xlu1 %525  ;;  %v614_v53 = vsel %vm613_vm6, %v612_v43, %v607_v31  ;;  %v547_v54 = vadd.f32 %v1139_v48, %v523_v50 }
 0x19f   : > { %v621_v44 = vsel %vm620_vm7, %v619_v41, %v614_v53  ;;  %v548_v56 = vadd.f32 %v1139_v48, %v526_v49 }
 0x1a0   : > { %v628_v57 = vsel %vm627_vm8, %v626_v51, %v621_v44  ;;  %v654_v1 = vrot.slane %v547_v54, %v653_v42 }
 0x1a1   : > { %v635_v61 = vsel %vm634_vm9, %v633_v55, %v628_v57  ;;  %v529_v63 = vpop.xlane.xlu0 %528  ;;  %v661_v4 = vrot.slane %v548_v56, %v660_v38 }
 0x1a2   : > { %v532_v62 = vpop.xlane.xlu1 %531  ;;  %v642_v0 = vsel %vm641_vm10, %v640_v52, %v635_v61  ;;  %v549_v3 = vadd.f32 %v1139_v48, %v529_v63 }
 0x1a3   : > { %v550_v2 = vadd.f32 %v1139_v48, %v532_v62  ;;  %v649_v5 = vsel %vm648_vm11, %v647_v60, %v642_v0 }
 0x1a4   : > { %v656_v47 = vsel %vm655_vm12, %v654_v1, %v649_v5  ;;  %v668_v7 = vrot.slane %v549_v3, %v667_v59 }
 0x1a5   : > { %v675_v6 = vrot.slane %v550_v2, %v674_v58  ;;  %v663_v8 = vsel %vm662_vm13, %v661_v4, %v656_v47 }
 0x1a6   : > { %v670_v9 = vsel %vm669_vm14, %v668_v7, %v663_v8 }
 0x1a7   : > { %v677_v48 = vsel %vm676_vm15, %v675_v6, %v670_v9 }
 0x1a8   : > { %679 = vst [vmem:[%s218_s8] sm:$0x1] %v677_v48 }
 0x1a9   : > { %891 = shalt.err (!%p888_p3)
}
 0x1aa   : > { %s892_s12 = scalar_lea.hbm %s1218_s13, 16  ;;  %s896_s24 = scalar_lea.hbm %s1267_s5, 48 }
 0x1ab   : > { %p893_p4 = scmp.ne.s32.totalorder %s1218_s13, %s892_s12  ;;  %p897_p9 = scmp.lt.u32.totalorder %s1218_s13, %s1267_s5 }
 0x1ac   : > { %p898_p10 = scmp.lt.u32.totalorder %s896_s24, %s892_s12  ;;  %p900_p12 = scmp.lt.u32.totalorder %s892_s12, %s1218_s13 }
 0x1ad   : > { %p894_p7 = pnand %p893_p4, %p1011_p5 }
 0x1ae   : > { %p899_p11 = por %p898_p10, %p897_p9 }
 0x1af   : > { %p895_p8 = pneg %p894_p7 }
 0x1b0   : > { %p901_p13 = por %p900_p12, %p899_p11 }
 0x1b2   : > { %p902_p0 = pnand %p901_p13, %p895_p8 }
 0x1b4   : > { %905 = shalt.err (!%p902_p0)
}
 0x1b5   : > { %839 = dma.vmem_to_hbm [thread:$0]  (%p1011_p5), %s1220_s9, 16, %s1218_s13, %s681_s14  }
 0x1b6 PF: > { %p845_p1 = scmp.ge.s32.totalorder %s940_s23, 2  ;;  %s705_s6 = sand.u32 1, %s928_s20  }
 0x1b7   : > { %s706_s7 = scalar_lea.sflag [#allocation4], %s705_s6 }
 0x1b8   : > { %p842_p2 = pnand %p845_p1, %p1015_p6 }
 0x1ba   : > { %923 = dma.done.wait (!%p842_p2), %s706_s7, 16  }
 0x1bb   : > { %925 = vsyncadd (!%p842_p2), %s706_s7, 4294967280  ;;  %p16_p3 = scmp.ge.s32.totalorder %s999_s25, 5   ;;  %s1270_s20 = smov %s932_s21 }
 0x1bc   : > { %s1271_s21 = smov %s936_s22  ;;  %s1272_s22 = smov %s1009_s28 }
 0x1bd   : > { %s1273_s23 = smov %s999_s25  ;;  %18 = sbr.rel (!%p16_p3) target bundleno = 5 (0x5), region = 75 }
 0x1c4   :  { %710 = vsyncpa [#allocation4], 1 }
 0x1c5   :  { %712 = vsyncpa [#allocation4 + $0x1], 1 }

</bundles_post_ra>
